<compile_context>
chip_gen: v5e
topology: v5e:2x2
jax: 0.10.0
libtpu: 0.0.40
codegen_flags: <defaults>
</compile_context>

<pallas_src>
import functools

import jax
import jax.numpy as jnp
from jax.experimental import pallas as pl
from jax.experimental.pallas import tpu as pltpu


def _int_pow(x, n):
    """x ** n for a static positive int n via repeated squaring (VPU only)."""
    result = None
    base = x
    while n > 0:
        if n & 1:
            result = base if result is None else result * base
        n >>= 1
        if n > 0:
            base = base * base
    return result


def _round_up(a, b):
    return -(-a // b) * b


def _gem_kernel(p_ref, x_ref, o_ref, *, eps, k, wk, inv_win,
                p_int, p_half, inv_p_static):
    # p_ref : SMEM (1,) f32 (only read on the general, non-static-p path)
    # k == 1: x_ref (tile_r, H*W)      o_ref (tile_r, 1)
    # k  > 1: x_ref (tile_r, hk, W)    o_ref (tile_r, k)
    #
    # NOTE: when rows % tile_r != 0 the last block's tail rows hold stale VMEM
    # data.  Every reduction below is strictly row-local, so those rows only
    # produce garbage that Pallas discards at the partial output writeback;
    # nothing can trap or contaminate valid rows, hence no per-element mask is
    # paid on any tile.
    x = x_ref[...].astype(jnp.float32)
    # TODO(synk): for bf16 inputs on v6e/v7x the clamp/pow could stay in bf16
    # (packed VALU) with f32 accumulation only; kept f32 throughout for v5e
    # compatibility and because the example input is f32.
    x = jnp.maximum(x, eps)                      # clamp(min=eps)

    if p_int is not None:
        xp = _int_pow(x, p_int)                  # VPU-only fast path (p=3 default)
        inv_p = inv_p_static
    elif p_half is not None:
        # static half-integer p = p_half + 0.5: one EUP sqrt instead of exp+log
        r = jnp.sqrt(x)
        xp = r if p_half == 0 else _int_pow(x, p_half) * r
        inv_p = inv_p_static
    else:
        p = p_ref[0]
        xp = jnp.exp(p * jnp.log(x))             # x ** p (x > 0 after clamp)
        inv_p = 1.0 / p                          # once per tile

    if k == 1:
        # Mean over the full window sitting on the lane axis (XLU reduce).
        m = jnp.sum(xp, axis=-1, keepdims=True) * inv_win        # (tile_r, 1)
    else:
        # Sum over the sublane (hi) axis, then one small MXU matmul against a
        # constant 0/1 block-indicator computes all k segmented window sums at
        # once -- no unaligned lane slices or concatenates.
        s = jnp.sum(xp, axis=1)                                   # (tile_r, W)
        w_dim = s.shape[-1]
        src = jax.lax.broadcasted_iota(jnp.int32, (w_dim, k), 0) // wk
        dst = jax.lax.broadcasted_iota(jnp.int32, (w_dim, k), 1)
        seg = (src == dst).astype(jnp.float32)                    # (W, k)
        m = jax.lax.dot_general(
            s, seg, (((1,), (0,)), ((), ())),
            precision=jax.lax.Precision.HIGHEST,
            preferred_element_type=jnp.float32) * inv_win          # (tile_r, k)

    if p_int == 1:
        y = m
    else:
        y = jnp.exp(jnp.log(m) * inv_p)          # m ** (1/p), per pooled output

    o_ref[...] = y.astype(o_ref.dtype)


def _vmem_budget():
    """Returns (target padded bytes per input block, scoped vmem_limit_bytes)."""
    cap = None
    try:
        cap = int(pltpu.get_tpu_info().vmem_capacity_bytes)
    except Exception:
        cap = None
    if cap is not None and cap >= 96 * (1 << 20):
        # v5e / v6e class (128 MiB physical VMEM): larger tiles, 64 MiB limit.
        return 16 * (1 << 20), 64 * (1 << 20)
    # v7x class (64 MiB physical per TensorCore) or unknown: conservative.
    return 8 * (1 << 20), 40 * (1 << 20)


def _choose_tile_r(rows, padded_row_bytes, target_block_bytes, row_align):
    """Row-tile size: padded-byte sized, >= ~8 grid steps when non-trivial,
    and preferring an exact divisor of `rows` (no ragged tail block)."""
    total = rows * padded_row_bytes
    if rows <= row_align or total <= (1 << 20):
        return rows                      # tiny input: one full-dim block
    max_rows_vmem = max(row_align, target_block_bytes // padded_row_bytes)
    min_steps = 8                        # DMA/compute overlap + v7x megacore
    cap_steps = max(row_align, rows // min_steps)
    tile_max = min(max_rows_vmem, cap_steps, (rows // row_align) * row_align)
    tile_max = max(row_align, (tile_max // row_align) * row_align)
    t = tile_max
    while t >= row_align:                # prefer an exact divisor of rows
        if rows % t == 0:
            return t
        t -= row_align
    return tile_max                      # ragged tail block (safe, see kernel)


def gem_forward(x, p, *, eps=1e-6, k=1, p_int=None, p_half=None):
    """x: (N, C, H, W), p: (1,) float32. Returns (N, C, k, k)."""
    N, C, H, W = x.shape
    assert H % k == 0 and W % k == 0, "H and W must be divisible by k"
    hk, wk = H // k, W // k

    p = jnp.asarray(p, jnp.float32).reshape((1,))
    itemsize = jnp.dtype(x.dtype).itemsize
    sub_align = 8 * max(1, 4 // itemsize)        # 8 (f32) / 16 (bf16) / 32 (int8)

    # Pure (zero-copy) reshapes of NCHW -- no host-side transpose pass, so this
    # bandwidth-bound op reads HBM exactly once.
    if k == 1:
        rows = N * C
        xr = x.reshape(rows, H * W)
        block_tail = (H * W,)
        in_index_map = lambda i: (i, 0)
        padded_row_bytes = _round_up(H * W, 128) * itemsize
    else:
        rows = N * C * k
        xr = x.reshape(rows, hk, W)
        block_tail = (hk, W)
        in_index_map = lambda i: (i, 0, 0)
        padded_row_bytes = (_round_up(hk, sub_align) * _round_up(W, 128)
                            * itemsize)

    target_block_bytes, vmem_limit = _vmem_budget()
    tile_r = _choose_tile_r(rows, padded_row_bytes, target_block_bytes,
                            sub_align)
    grid = (pl.cdiv(rows, tile_r),)

    padded_block_bytes = _round_up(tile_r, sub_align) * padded_row_bytes
    vmem_limit = max(vmem_limit, 2 * padded_block_bytes + 4 * (1 << 20))

    inv_p_static = None
    if p_int is not None:
        inv_p_static = 1.0 / float(p_int)
    elif p_half is not None:
        inv_p_static = 1.0 / (float(p_half) + 0.5)

    kernel = functools.partial(
        _gem_kernel, eps=float(eps), k=int(k), wk=int(wk),
        inv_win=1.0 / float(hk * wk),
        p_int=p_int, p_half=p_half, inv_p_static=inv_p_static)

    out = pl.pallas_call(
        kernel,
        grid=grid,
        in_specs=[
            pl.BlockSpec(memory_space=pltpu.MemorySpace.SMEM),   # p scalar
            pl.BlockSpec((tile_r,) + block_tail, in_index_map),  # x row tile
        ],
        out_specs=pl.BlockSpec((tile_r, k), lambda i: (i, 0)),
        out_shape=jax.ShapeDtypeStruct((rows, k), x.dtype),
        compiler_params=pltpu.CompilerParams(
            dimension_semantics=("parallel",),
            vmem_limit_bytes=int(vmem_limit),
        ),
    )(p, xr)

    return out.reshape(N, C, k, k)


class GeM:
    """Parameter container mirroring the PyTorch module (deterministic init)."""

    def __init__(self, p=3, eps=1e-6, k=1):
        self.p = jnp.ones((1,), jnp.float32) * p   # nn.Parameter(torch.ones(1)*p)
        self.eps = float(eps)
        self.k = int(k)

    def __call__(self, x):
        # Static-p fast paths (VPU-only integer pow, or int-pow * sqrt for
        # half-integer p).  A traced / arbitrary p falls back to the general
        # exp(p*log(x)) kernel path.
        p_int = p_half = None
        try:
            pv = float(jax.device_get(jnp.asarray(self.p)).reshape(-1)[0])
            if pv == round(pv) and 1.0 <= pv <= 16.0:
                p_int = int(round(pv))
            elif 2.0 * pv == round(2.0 * pv) and 0.5 <= pv <= 16.5:
                p_half = int(round(pv - 0.5))
        except Exception:
            pass
        return gem_forward(x, self.p, eps=self.eps, k=self.k,
                           p_int=p_int, p_half=p_half)


def _gem_reference(x, p, eps=1e-6, k=1):
    N, C, H, W = x.shape
    hk, wk = H // k, W // k
    xc = jnp.maximum(x, eps) ** p[0]
    xr = xc.reshape(N, C, k, hk, k, wk).mean(axis=(3, 5))
    return xr ** (1.0 / p[0])


if __name__ == "__main__":
    key = jax.random.PRNGKey(0)
    x = jax.random.normal(key, (2, 4, 16, 16), dtype=jnp.float32)

    # Default module: p=3 (integer VPU fast path), k=1.
    mod = GeM(p=3, eps=1e-6, k=1)
    y = jax.block_until_ready(mod(x))
    y_ref = _gem_reference(x, mod.p, eps=mod.eps, k=mod.k)
    assert y.shape == (2, 4, 1, 1)
    assert jnp.allclose(y, y_ref, rtol=1e-4, atol=1e-5)

    # Half-integer static p (sqrt fast path) with k>1 windowing (MXU seg-sum).
    mod2 = GeM(p=2.5, eps=1e-6, k=2)
    y2 = jax.block_until_ready(mod2(x))
    y2_ref = _gem_reference(x, mod2.p, eps=mod2.eps, k=mod2.k)
    assert y2.shape == (2, 4, 2, 2)
    assert jnp.allclose(y2, y2_ref, rtol=1e-4, atol=1e-5)

    # General (non-static-representable) p exercises the exp/log kernel path.
    mod3 = GeM(p=3.3, eps=1e-6, k=2)
    y3 = jax.block_until_ready(mod3(x))
    y3_ref = _gem_reference(x, mod3.p, eps=mod3.eps, k=mod3.k)
    assert y3.shape == (2, 4, 2, 2)
    assert jnp.allclose(y3, y3_ref, rtol=2e-4, atol=1e-5)

    print("KERNEL_OK")
</pallas_src>

<mosaic_0001>
module attributes {stable_mosaic.version = 11 : i64} {
  func.func @_gem_kernel(%arg0: i32, %arg1: memref<1xf32, #tpu.memory_space<smem>>, %arg2: memref<8x256xf32, #tpu.memory_space<vmem>>, %arg3: memref<8x1xf32, #tpu.memory_space<vmem>>) attributes {dimension_semantics = [#tpu.dimension_semantics<parallel>], iteration_bounds = array<i64: 1>, scalar_prefetch = 0 : i64, scratch_operands = 0 : i64, tpu.core_type = #tpu.core_type<tc>, window_params = [{transform_indices = @transform_0, window_bounds = array<i64: 1>}, {transform_indices = @transform_1, window_bounds = array<i64: 8, 256>}, {transform_indices = @transform_2, window_bounds = array<i64: 8, 1>}]} {
    %c0 = arith.constant 0 : index
    %c0_0 = arith.constant 0 : index
    %0 = vector.load %arg2[%c0, %c0_0] : memref<8x256xf32, #tpu.memory_space<vmem>>, vector<8x256xf32>
    %cst = arith.constant 9.99999997E-7 : f32
    %1 = vector.broadcast %cst : f32 to vector<8x256xf32>
    %2 = arith.maximumf %0, %1 : vector<8x256xf32>
    %3 = arith.mulf %2, %2 : vector<8x256xf32>
    %4 = arith.mulf %2, %3 : vector<8x256xf32>
    %cst_1 = arith.constant dense<0.000000e+00> : vector<8xf32>
    %5 = vector.multi_reduction <add>, %4, %cst_1 [1] : vector<8x256xf32> to vector<8xf32>
    %6 = vector.shape_cast %5 : vector<8xf32> to vector<8x1xf32>
    %cst_2 = arith.constant 3.906250e-03 : f32
    %7 = vector.broadcast %cst_2 : f32 to vector<8x1xf32>
    %8 = arith.mulf %6, %7 : vector<8x1xf32>
    %9 = math.log %8 : vector<8x1xf32>
    %cst_3 = arith.constant 0.333333343 : f32
    %10 = vector.broadcast %cst_3 : f32 to vector<8x1xf32>
    %11 = arith.mulf %9, %10 : vector<8x1xf32>
    %12 = math.exp %11 : vector<8x1xf32>
    %c0_4 = arith.constant 0 : index
    %c0_5 = arith.constant 0 : index
    %13 = vector.load %arg3[%c0_4, %c0_5] : memref<8x1xf32, #tpu.memory_space<vmem>>, vector<8x1xf32>
    tpu.vector_store %arg3[%c0_4, %c0_5], %12 {strides = array<i32>} : memref<8x1xf32, #tpu.memory_space<vmem>>, vector<8x1xf32>,
    return
  }
  func.func @transform_0(%arg0: i32) -> i32 {
    %c0_i32 = arith.constant 0 : i32
    %c0_i32_0 = arith.constant 0 : i32
    return %c0_i32 : i32
  }
  func.func @transform_1(%arg0: i32) -> (i32, i32) {
    %c0_i32 = arith.constant 0 : i32
    %c0_i32_0 = arith.constant 0 : i32
    return %arg0, %c0_i32 : i32, i32
  }
  func.func @transform_2(%arg0: i32) -> (i32, i32) {
    %c0_i32 = arith.constant 0 : i32
    %c0_i32_0 = arith.constant 0 : i32
    return %arg0, %c0_i32 : i32, i32
  }
}

</mosaic_0001>

<bundles_post_ra>
// kernel: tpu_custom_call.1
= control target key start
LH: loop header
LB: loop body
LE: loop exit
PB: predicated region body
PF: predicated region fallthrough
CT: control target
= control target key end

     0   :  { %8 = vsyncpa [#allocation4], 0  ;;  %s81_s12 = smov [#allocation3]   ;;  %s103_s0 = inlined_call_operand.<no memory space> [shape: f32[1], index: 0, kind: input, shape index: {}]   ;;  %s104_s1 = inlined_call_operand.hbm [shape: f32[8,256], index: 1, kind: input, shape index: {}]   ;;  %s105_s2 = inlined_call_operand.vmem [shape: f32[8,1], index: 2, kind: output, shape index: {}]  }
   0x1   :  { %s16_s11 = sshll.u32 %s104_s1, 4  ;;  %s18_s13 = sshll.u32 %s81_s12, 4  ;;  %s17_s11 = int_to_ptr.hbm [resolvable:$true] %s16_s11  ;;  %s19_s13 = int_to_ptr.vmem [resolvable:$true] %s18_s13 }
   0x2   :  { %21 = dma.hbm_to_vmem [thread:$0]  %s17_s11, 256, %s19_s13, [#allocation4]  }
   0x3   :  { %79 = dma.done.wait [#allocation4], 256  }
   0x4   :  { %80 = vsyncadd [#allocation4], 4294967040  ;;  %v26_v0 = vld [vmem:[#allocation3] sm:$0xff]  ;;  %v27_v1 = vld [vmem:[#allocation3 + $0x8] sm:$0xff]  ;;  %vm43_vm0 = vcmask 7168  }
   0x5   :  { %v28_v2 = vmax.f32 %v26_v0, 1e-06  ;;  %v29_v3 = vmax.f32 %v27_v1, 1e-06 }
   0x7   :  { %v30_v4 = vmul.f32 %v28_v2, %v28_v2  ;;  %v31_v5 = vmul.f32 %v29_v3, %v29_v3 }
   0x9   :  { %v32_v6 = vmul.f32 %v30_v4, %v28_v2  ;;  %v33_v7 = vmul.f32 %v31_v5, %v29_v3 }
   0xb   :  { %v34_v8 = vadd.f32 %v33_v7, %v32_v6 }
   0xd   :  { %35 = vadd.xlane.f32.xlu0 %v34_v8 }
  0x80   :  { %v36_v9 = vpop.xlane.xlu0 %35 }
  0x81   :  { %v37_v10 = vmul.f32 0.00390625, %v36_v9 }
  0x83   :  { %51 = vlog2.f32 %v37_v10 }
  0x89   :  { %v52_v11 = vpop.eup %51 }
  0x8a   :  { %v39_v12 = vmul.f32 0.6931472, %v52_v11 }
  0x8c   :  { %v40_v13 = vmul.f32 0.33333334, %v39_v12 }
  0x8e   :  { %v41_v14 = vmul.f32 1.442695, %v40_v13 }
  0x90   :  { %53 = vpow2.f32 %v41_v14 }
  0x96   :  { %v54_v15 = vpop.eup %53 }
  0x97   :  { %44 = vst.msk [vmem:[%s105_s2] sm:$0xff] %vm43_vm0, %v54_v15 }
  0x98   :  { %49 = vsyncpa [#allocation4], 1 }

</bundles_post_ra>
